<compile_context>
chip_gen: v7x
topology: tpu7x:2x2x1
jax: 0.10.0
libtpu: 0.0.40
codegen_flags: <defaults>
</compile_context>

<pallas_src>
import math
import functools

import jax
import jax.numpy as jnp
from jax.experimental import pallas as pl
from jax.experimental.pallas import tpu as pltpu


# --------------------------------------------------------------------------- #
# Kernel 1: one-shot gate + L0 penalty (tiny: (F, inDim) x (inDim, outDim))
# --------------------------------------------------------------------------- #
def _gate_l0_kernel(ind_ref, wt_ref, b_ref, gate_ref, l0_ref,
                    *, beta, zeta, gamma):
    # indicator (F, inDim) @ weight_T (inDim, outDim) -> (F, outDim)
    logits = jnp.dot(ind_ref[...], wt_ref[...],
                     preferred_element_type=jnp.float32) + b_ref[...]
    linear_out = jnp.maximum(logits, 0.0)

    # hard-concrete gate (deterministic / eval path), kept in f32
    s = jax.nn.sigmoid(linear_out / beta)
    gate_ref[...] = jnp.clip(s * (zeta - gamma) + gamma, 0.0, 1.0)

    # expected L0 penalty (scalar) -> SMEM
    shift = beta * math.log(-gamma / zeta)
    l0_ref[0, 0] = jnp.sum(jax.nn.sigmoid(linear_out - shift))


# --------------------------------------------------------------------------- #
# Kernel 2: streaming pruning multiply (memory-bound; 2-D batch x lane tiling)
# --------------------------------------------------------------------------- #
def _prune_kernel(gate_ref, feat_ref, out_ref):
    # gate: (1, TN) f32 ; feat/out: (TB, TN) native dtype
    out_ref[...] = (feat_ref[...].astype(jnp.float32)
                    * gate_ref[...]).astype(out_ref.dtype)


def _cdiv(a, b):
    return (a + b - 1) // b


def _choose_tiles(B, N, itemsize, max_tile_bytes):
    """Pick (tb, tn) for a (B, N) stream.

    Constraints:
      * tn multiple of 128 (or == N)            [lane rule]
      * tb multiple of 8   (or == B)            [sublane rule]
      * block ~<= max_tile_bytes (best effort)
      * >= 2 total grid steps when B allows (v7x megacore)
    """
    min_tb = B if B <= 8 else 8

    # lane tile
    if (N % 128 != 0) or (N * min_tb * itemsize <= max_tile_bytes):
        tn = N
    else:
        tn_budget = max(1, max_tile_bytes // (min_tb * itemsize))
        tn = max(128, min(N, (tn_budget // 128) * 128))

    # batch tile
    tb = min(B, max(1, max_tile_bytes // (tn * itemsize)))
    if tb >= 8:
        tb = (tb // 8) * 8
    elif B > 8:
        tb = 8
    else:
        tb = B

    # ensure at least two grid steps so both v7x TensorCores get work
    if _cdiv(B, tb) * _cdiv(N, tn) < 2 and B > 8:
        tb = max(8, (_cdiv(B, 2) // 8) * 8)

    return tb, tn


def feature_pruning_forward(feature, indicator, weight, bias,
                            beta, zeta=1.1, gamma=-0.1,
                            max_tile_bytes=8 * 1024 * 1024):
    """feature: (B, F, outDim)  (native dtype, streamed as-is)
       indicator: (F, inDim)
       weight: (outDim, inDim)  [PyTorch nn.Linear layout]
       bias: (outDim,)"""
    B, F, outDim = feature.shape
    N = F * outDim

    # ---- step 1: gate + L0 (tiny one-shot kernel, f32 math, off crit path) --
    gate_kernel = functools.partial(_gate_l0_kernel,
                                    beta=float(beta), zeta=float(zeta),
                                    gamma=float(gamma))
    gate, l0 = pl.pallas_call(
        gate_kernel,
        out_shape=(
            jax.ShapeDtypeStruct((F, outDim), jnp.float32),     # gate (f32)
            jax.ShapeDtypeStruct((1, 1), jnp.float32),          # L0 scalar
        ),
        in_specs=[
            pl.BlockSpec(memory_space=pltpu.MemorySpace.VMEM),  # indicator
            pl.BlockSpec(memory_space=pltpu.MemorySpace.VMEM),  # weight.T
            pl.BlockSpec(memory_space=pltpu.MemorySpace.VMEM),  # bias (1,outDim)
        ],
        out_specs=(
            pl.BlockSpec(memory_space=pltpu.MemorySpace.VMEM),
            pl.BlockSpec(memory_space=pltpu.MemorySpace.SMEM),
        ),
    )(indicator.astype(jnp.float32),
      weight.astype(jnp.float32).T,                 # (inDim, outDim), tiny
      bias.reshape(1, outDim).astype(jnp.float32))

    # ---- step 2: stream feature * gate on flattened (B, N) lane-dense view --
    itemsize = jnp.dtype(feature.dtype).itemsize
    tb, tn = _choose_tiles(B, N, itemsize, max_tile_bytes)
    grid = (pl.cdiv(B, tb), pl.cdiv(N, tn))

    feat2d = feature.reshape(B, N)
    gate2d = gate.reshape(1, N)

    out2d = pl.pallas_call(
        _prune_kernel,
        out_shape=jax.ShapeDtypeStruct((B, N), feature.dtype),
        grid=grid,
        in_specs=[
            # gate: resident across the batch axis, tiny re-DMA per lane tile
            pl.BlockSpec((1, tn), lambda b, n: (0, n)),
            pl.BlockSpec((tb, tn), lambda b, n: (b, n)),
        ],
        out_specs=pl.BlockSpec((tb, tn), lambda b, n: (b, n)),
        compiler_params=pltpu.CompilerParams(
            dimension_semantics=("parallel", "parallel"),
            vmem_limit_bytes=48 * 1024 * 1024,
        ),
    )(gate2d, feat2d)

    return out2d.reshape(B, F, outDim), l0[0, 0]


# --------------------------------------------------------------------------- #
# Pure-JAX reference (mirrors the PyTorch module's forward)
# --------------------------------------------------------------------------- #
def _reference(feature, indicator, weight, bias, beta, zeta, gamma):
    lin = jnp.maximum(indicator @ weight.T + bias, 0.0)
    s = jax.nn.sigmoid(lin / beta)
    gate = jnp.clip(s * (zeta - gamma) + gamma, 0.0, 1.0)
    l0 = jnp.sum(jax.nn.sigmoid(lin - beta * math.log(-gamma / zeta)))
    return feature * gate[None, :, :], l0


if __name__ == "__main__":
    beta, zeta, gamma = 0.66, 1.1, -0.1
    inDim, F, outDim = 32, 8, 128

    key = jax.random.PRNGKey(0)
    k_ind, k_w, k_b, k1, k2, k3 = jax.random.split(key, 6)

    indicator = jax.random.normal(k_ind, (F, inDim), dtype=jnp.float32)
    bound = 1.0 / math.sqrt(inDim)
    weight = jax.random.uniform(k_w, (outDim, inDim), jnp.float32, -bound, bound)
    bias = jax.random.uniform(k_b, (outDim,), jnp.float32, -bound, bound)

    def check(feature, max_tile_bytes):
        out, l0 = feature_pruning_forward(feature, indicator, weight, bias,
                                          beta, zeta, gamma,
                                          max_tile_bytes=max_tile_bytes)
        out = jax.block_until_ready(out)
        l0 = jax.block_until_ready(l0)
        ref_out, ref_l0 = _reference(feature, indicator, weight, bias,
                                     beta, zeta, gamma)
        assert jnp.allclose(out, ref_out, atol=1e-5, rtol=1e-5)
        assert jnp.allclose(l0, ref_l0, atol=1e-4, rtol=1e-5)

    # --- test 1: small batch, default (large) tile budget -> grid (1, 1) ----
    feat1 = jax.random.normal(k1, (2, F, outDim), dtype=jnp.float32)
    check(feat1, 8 * 1024 * 1024)

    # --- test 2: ragged batch (B=10, tb=8) -> cdiv grid with padded tail ----
    feat2 = jax.random.normal(k2, (10, F, outDim), dtype=jnp.float32)
    check(feat2, 8 * F * outDim * 4)

    # --- test 3: tiny budget -> lane tiling + sublane-broadcast gate --------
    feat3 = jax.random.normal(k3, (4, F, outDim), dtype=jnp.float32)
    check(feat3, 2048)

    print("KERNEL_OK")
</pallas_src>

<mosaic_0001>
module attributes {stable_mosaic.version = 11 : i64} {
  func.func @_gate_l0_kernel(%arg0: memref<8x32xf32, #tpu.memory_space<vmem>>, %arg1: memref<32x128xf32, #tpu.memory_space<vmem>>, %arg2: memref<1x128xf32, #tpu.memory_space<vmem>>, %arg3: memref<8x128xf32, #tpu.memory_space<vmem>>, %arg4: memref<1x1xf32, #tpu.memory_space<smem>>) attributes {dimension_semantics = [], scalar_prefetch = 0 : i64, scratch_operands = 0 : i64, tpu.core_type = #tpu.core_type<tc>} {
    %c0 = arith.constant 0 : index
    %c0_0 = arith.constant 0 : index
    %0 = vector.load %arg0[%c0, %c0_0] : memref<8x32xf32, #tpu.memory_space<vmem>>, vector<8x32xf32>
    %c0_1 = arith.constant 0 : index
    %c0_2 = arith.constant 0 : index
    %1 = vector.load %arg1[%c0_1, %c0_2] : memref<32x128xf32, #tpu.memory_space<vmem>>, vector<32x128xf32>
    %cst = arith.constant dense<0.000000e+00> : vector<8x128xf32>
    %2 = tpu.matmul %0, %1, %cst {dimension_numbers = #tpu.dot_dimension_numbers<[1], [0], [0], [1], [0, 0, 1, 1], [], []>} : vector<8x32xf32>, vector<32x128xf32>, vector<8x128xf32> -> vector<8x128xf32>
    %c0_3 = arith.constant 0 : index
    %c0_4 = arith.constant 0 : index
    %3 = vector.load %arg2[%c0_3, %c0_4] : memref<1x128xf32, #tpu.memory_space<vmem>>, vector<1x128xf32>
    %4 = vector.broadcast %3 : vector<1x128xf32> to vector<8x128xf32>
    %5 = arith.addf %2, %4 : vector<8x128xf32>
    %cst_5 = arith.constant 0.000000e+00 : f32
    %6 = vector.broadcast %cst_5 : f32 to vector<8x128xf32>
    %7 = arith.maximumf %5, %6 : vector<8x128xf32>
    %cst_6 = arith.constant 6.600000e-01 : f32
    %8 = vector.broadcast %cst_6 : f32 to vector<8x128xf32>
    %9 = arith.divf %7, %8 : vector<8x128xf32>
    %10 = arith.negf %9 : vector<8x128xf32>
    %11 = math.exp %10 : vector<8x128xf32>
    %cst_7 = arith.constant 1.000000e+00 : f32
    %12 = vector.broadcast %cst_7 : f32 to vector<8x128xf32>
    %13 = arith.addf %12, %11 : vector<8x128xf32>
    %14 = arith.divf %12, %13 : vector<8x128xf32>
    %cst_8 = arith.constant 1.200000e+00 : f32
    %15 = vector.broadcast %cst_8 : f32 to vector<8x128xf32>
    %16 = arith.mulf %14, %15 : vector<8x128xf32>
    %cst_9 = arith.constant -1.000000e-01 : f32
    %17 = vector.broadcast %cst_9 : f32 to vector<8x128xf32>
    %18 = arith.addf %16, %17 : vector<8x128xf32>
    %cst_10 = arith.constant 0.000000e+00 : f32
    %cst_11 = arith.constant 1.000000e+00 : f32
    %19 = vector.broadcast %cst_10 : f32 to vector<8x128xf32>
    %20 = arith.maximumf %19, %18 : vector<8x128xf32>
    %21 = vector.broadcast %cst_11 : f32 to vector<8x128xf32>
    %22 = arith.minimumf %21, %20 : vector<8x128xf32>
    %c0_12 = arith.constant 0 : index
    %c0_13 = arith.constant 0 : index
    %23 = vector.load %arg3[%c0_12, %c0_13] : memref<8x128xf32, #tpu.memory_space<vmem>>, vector<8x128xf32>
    tpu.vector_store %arg3[%c0_12, %c0_13], %22 {strides = array<i32>} : memref<8x128xf32, #tpu.memory_space<vmem>>, vector<8x128xf32>,
    %cst_14 = arith.constant -1.58261085 : f32
    %24 = vector.broadcast %cst_14 : f32 to vector<8x128xf32>
    %25 = arith.subf %7, %24 : vector<8x128xf32>
    %26 = arith.negf %25 : vector<8x128xf32>
    %27 = math.exp %26 : vector<8x128xf32>
    %cst_15 = arith.constant 1.000000e+00 : f32
    %28 = vector.broadcast %cst_15 : f32 to vector<8x128xf32>
    %29 = arith.addf %28, %27 : vector<8x128xf32>
    %30 = arith.divf %28, %29 : vector<8x128xf32>
    %31 = vector.shape_cast %30 : vector<8x128xf32> to vector<1x8x128xf32>
    %cst_16 = arith.constant dense<0.000000e+00> : vector<1xf32>
    %32 = vector.multi_reduction <add>, %31, %cst_16 [1, 2] : vector<1x8x128xf32> to vector<1xf32>
    %33 = vector.shape_cast %32 : vector<1xf32> to vector<1x1x1xf32>
    %34 = vector.extract %33[0, 0, 0] : f32 from vector<1x1x1xf32>
    %c0_17 = arith.constant 0 : index
    %c0_18 = arith.constant 0 : index
    %35 = memref.load %arg4[%c0_17, %c0_18] : memref<1x1xf32, #tpu.memory_space<smem>>
    memref.store %34, %arg4[%c0_17, %c0_18] : memref<1x1xf32, #tpu.memory_space<smem>>
    return
  }
}

</mosaic_0001>

<bundles_post_ra>
// kernel: tpu_custom_call.1
= control target key start
LH: loop header
LB: loop body
LE: loop exit
PB: predicated region body
PF: predicated region fallthrough
CT: control target
= control target key end

     0   :  { %10 = vsyncpa [#allocation3], 0  ;;  %s413_s0 = inlined_call_operand.hbm [shape: f32[8,32], index: 0, kind: input, shape index: {}]   ;;  %s414_s1 = inlined_call_operand.hbm [shape: f32[32,128], index: 1, kind: input, shape index: {}]   ;;  %s415_s2 = inlined_call_operand.vmem [shape: f32[1,128], index: 2, kind: input, shape index: {}]   ;;  %s416_s3 = inlined_call_operand.hbm [shape: f32[8,128], index: 3, kind: output, shape index: {0}]   ;;  %s417_s4 = inlined_call_operand.hbm [shape: f32[1,1], index: 4, kind: output, shape index: {1}]  }
   0x1   :  { %11 = vsyncpa [#allocation7], 0 }
   0x2   :  { %12 = vsyncpa [#allocation4], 0 }
   0x3   :  { %13 = vsyncpa [#allocation5], 0  ;;  %s321_s15 = smov [#allocation2]   ;;  %s322_s17 = smov [#allocation6]  }
   0x4   :  { %s20_s16 = sshll.u32 %s321_s15, 4  ;;  %s29_s18 = sshll.u32 %s322_s17, 4  ;;  %s21_s16 = int_to_ptr.vmem [resolvable:$true] %s20_s16  ;;  %s355_s18 = int_to_ptr.vmem [resolvable:$true] %s29_s18 }
   0x5   :  { %s237_s21 = scalar_lea.hbm %s413_s0, 128 }
   0x6   :  { %p238_p0 = scmp.ne.s32.totalorder %s413_s0, %s237_s21  ;;  %p241_p1 = scmp.lt.u32.totalorder %s237_s21, %s413_s0 }
   0x8   :  { %p243_p2 = pnand %p241_p1, %p238_p0 }
   0xa   :  { %246 = shalt.err (!%p243_p2)
}
   0xb   :  { %s247_s26 = scalar_lea.vmem %s21_s16, 128  ;;  %p252_p4 = scmp.lt.s32.totalorder %s21_s16, %s21_s16 }
   0xc   :  { %p248_p3 = scmp.ne.s32.totalorder %s21_s16, %s247_s26  ;;  %p253_p5 = scmp.lt.s32.totalorder %s247_s26, %s247_s26 }
   0xe   :  { %p254_p6 = por %p253_p5, %p252_p4 }
  0x10   :  { %p255_p7 = pnand %p254_p6, %p248_p3 }
  0x12   :  { %258 = shalt.err (!%p255_p7)
}
  0x13   :  { %23 = dma.hbm_to_vmem [thread:$0]  %s413_s0, 128, %s21_s16, [#allocation3]  }
  0x14   :  { %s259_s5 = scalar_lea.hbm %s414_s1, 512 }
  0x15   :  { %p260_p8 = scmp.ne.s32.totalorder %s414_s1, %s259_s5  ;;  %p263_p9 = scmp.lt.u32.totalorder %s259_s5, %s414_s1 }
  0x17   :  { %p265_p10 = pnand %p263_p9, %p260_p8 }
  0x19   :  { %268 = shalt.err (!%p265_p10)
}
  0x1a   :  { %s269_s10 = scalar_lea.vmem %s355_s18, 512  ;;  %p274_p12 = scmp.lt.s32.totalorder %s355_s18, %s355_s18 }
  0x1b   :  { %p270_p11 = scmp.ne.s32.totalorder %s355_s18, %s269_s10  ;;  %p275_p13 = scmp.lt.s32.totalorder %s269_s10, %s269_s10 }
  0x1d   :  { %p276_p0 = por %p275_p13, %p274_p12 }
  0x1f   :  { %p277_p1 = pnand %p276_p0, %p270_p11 }
  0x21   :  { %280 = shalt.err (!%p277_p1)
}
  0x22   :  { %s323_s0 = smov 128   ;;  %s324_s11 = smov 8  }
  0x23   :  { %35 = dma.hbm_to_vmem [thread:$0]  %s414_s1, 512, %s355_s18, [#allocation7], %s323_s0, %s323_s0, %s324_s11  }
  0x24   :  { %313 = dma.done.wait [#allocation3], 128  }
  0x25   :  { %314 = vsyncadd [#allocation3], 4294967168 }
  0x26   :  { %315 = dma.done.wait [#allocation7], 512  }
  0x27   :  { %316 = vsyncadd [#allocation7], 4294966784  ;;  %v325_v0 = vmov 0.0|0.0   ;;  %vm326_vm0 = vmmov 0   ;;  %v327_v1 = vmov 0.0   ;;  %v45_v2 = vld [vmem:[#allocation6] sm:$0xff] }
  0x28   :  { %212 = vmatprep.subr.bf16.mxu0 %v325_v0  ;;  %209 = vmatprep.mubr.msk.f32.mxu0 %vm326_vm0, %v327_v1  ;;  %v46_v3 = vld [vmem:[#allocation6 + $0x8] sm:$0xff]  ;;  %v47_v4 = vld [vmem:[#allocation6 + $0x10] sm:$0xff]  ;;  %v48_v6 = vld [vmem:[#allocation6 + $0x18] sm:$0xff]  ;;  %vm56_vm1 = vcmask 261120  }
  0x29   :  { %v213_v5 = vpack.c.bf16 %v46_v3, %v45_v2  ;;  %v216_v7 = vpack.c.bf16 %v48_v6, %v47_v4  ;;  %v44_v8 = vld [vmem:[#allocation2] sm:$0xff] }
  0x2a   :  { %v191_v9 = vld [vmem:[%s415_s2] ss:$0 sm:$0xff]  ;;  %s328_s2 = smov [#allocation8]  }
  0x2b   :  { %214 = vmatpush3.bf16.msra.mxu0 %v213_v5  ;;  %s168_s15 = sshll.u32 %s328_s2, 4  ;;  %s169_s15 = int_to_ptr.vmem [resolvable:$true] %s168_s15 }
  0x2c   :  { %215 = vmatprep.subr.bf16.mxu0 %v325_v0  ;;  %s281_s16 = scalar_lea.vmem %s169_s15, 128  ;;  %p286_p3 = scmp.lt.s32.totalorder %s169_s15, %s169_s15 }
  0x2d   :  { %p282_p2 = scmp.ne.s32.totalorder %s169_s15, %s281_s16  ;;  %p287_p4 = scmp.lt.s32.totalorder %s281_s16, %s281_s16 }
  0x2f   :  { %217 = vmatpush3.bf16.msra.mxu0 %v216_v7  ;;  %p288_p5 = por %p287_p4, %p286_p3 }
  0x31   :  { %p289_p6 = pnand %p288_p5, %p282_p2 }
  0x32   :  { %210 = vmatmul.mubr.msk.f32.vlgmr.msra.gmra.mrb[0].mxu0 %vm56_vm1, %v44_v8 }
 0x105   :  { %v126_v10 = vpop.f32.mrb[0].mxu0 }
 0x106   :  { %v127_v11 = vadd.f32 %v191_v9, %v126_v10  ;;  %v211_v12 = vpop.f32.mrb[1].mxu0 }
 0x108   :  { %v130_v13 = vmax.f32 %v127_v11, 0.0 }
 0x10a   :  { %v193_v14 = vmul.f32 -1.5151515, %v130_v13  ;;  %v194_v15 = vadd.f32 1.5826108, %v130_v13 }
 0x10c   :  { %v134_v16 = vmul.f32 1.442695, %v193_v14  ;;  %v195_v17 = vmul.f32 -1.442695, %v194_v15 }
 0x10e   :  { %229 = vpow2.f32 %v134_v16 }
 0x10f   :  { %231 = vpow2.f32 %v195_v17 }
 0x118   :  { %v230_v18 = vpop.eup %229 }
 0x119   :  { %v232_v19 = vpop.eup %231  ;;  %v136_v20 = vadd.f32 1.0, %v230_v18 }
 0x11a   :  { %v148_v21 = vadd.f32 1.0, %v232_v19 }
 0x11b   :  { %233 = vrcp.f32 %v136_v20 }
 0x11c   :  { %235 = vrcp.f32 %v148_v21 }
 0x125   :  { %v234_v22 = vpop.eup %233 }
 0x126   :  { %v236_v23 = vpop.eup %235  ;;  %v139_v24 = vmul.f32 1.2, %v234_v22 }
 0x127   :  { %151 = vadd.xlane.f32.xlu0 %v236_v23 }
 0x128   :  { %v140_v25 = vadd.f32 -0.1, %v139_v24 }
 0x12a   :  { %v141_v26 = vmax.f32 %v140_v25, 0.0 }
 0x12c   :  { %v142_v27 = vmin.f32 %v141_v26, 1.0 }
 0x12e   :  { %143 = vst [vmem:[#allocation8] sm:$0xff] %v142_v27 }
 0x12f   :  { %292 = shalt.err (!%p289_p6)
}
 0x130   :  { %s293_s19 = scalar_lea.hbm %s416_s3, 128 }
 0x131   :  { %p294_p7 = scmp.ne.s32.totalorder %s416_s3, %s293_s19  ;;  %p297_p8 = scmp.lt.u32.totalorder %s293_s19, %s416_s3 }
 0x133   :  { %p299_p9 = pnand %p297_p8, %p294_p7 }
 0x135   :  { %302 = shalt.err (!%p299_p9)
}
 0x136   :  { %171 = dma.vmem_to_hbm [thread:$0]  %s169_s15, 128, %s416_s3, [#allocation4]  }
 0x137   :  { %s303_s29 = scalar_lea.hbm %s417_s4, 16 }
 0x138   :  { %p304_p10 = scmp.ne.s32.totalorder %s417_s4, %s303_s29  ;;  %p307_p11 = scmp.lt.u32.totalorder %s303_s29, %s417_s4 }
 0x13a   :  { %p309_p12 = pnand %p307_p11, %p304_p10 }
 0x1b4   :  { %v152_v28 = vpop.xlane.xlu0 %151 }
 0x1b5   :  { %v153_v29 = vrot.slane %v152_v28, 4 }
 0x1b7   :  { %v154_v30 = vadd.f32 %v153_v29, %v152_v28 }
 0x1b9   :  { %v155_v31 = vrot.slane %v154_v30, 2 }
 0x1bb   :  { %v156_v32 = vadd.f32 %v155_v31, %v154_v30 }
 0x1bd   :  { %v157_v33 = vrot.slane %v156_v32, 1 }
 0x1bf   :  { %v158_v34 = vadd.f32 %v157_v33, %v156_v32 }
 0x1c1   :  { %218 = vpush %v158_v34 }
 0x1f2   :  { %s219_s26 = spop %218 }
 0x1f3   :  { %161 = sst [smem:[#allocation9]] %s219_s26 }
 0x1f4   :  { %312 = shalt.err (!%p309_p12)
}
 0x1f5   :  { %s329_s7 = smov [#allocation9]  }
 0x1f6   :  { %179 = dma.smem_to_hbm %s329_s7, 16, %s417_s4, [#allocation5]  }
 0x1f7   :  { %317 = dma.done.wait [#allocation4], 128  }
 0x1f8   :  { %318 = vsyncadd [#allocation4], 4294967168 }
 0x1f9   :  { %319 = dma.done.wait [#allocation5], 16  }
 0x1fa   :  { %320 = vsyncadd [#allocation5], 4294967280 }
 0x1fb   :  { %186 = sfence }
 0x1fc   :  { %187 = vsyncpa [#allocation3], 1 }
 0x1fd   :  { %188 = vsyncpa [#allocation7], 1 }
 0x1fe   :  { %189 = vsyncpa [#allocation4], 1 }
 0x1ff   :  { %190 = vsyncpa [#allocation5], 1 }

</bundles_post_ra>
